<compile_context>
chip_gen: v5e
topology: v5e:2x2
jax: 0.10.0
libtpu: 0.0.40
codegen_flags: <defaults>
</compile_context>

<pallas_src>
import jax
import jax.numpy as jnp
from jax.experimental import pallas as pl
from jax.experimental.pallas import tpu as pltpu


def _attention_kernel(q_ref, k_ref, v_ref, out_ref, attn_ref):
    # Block shapes: q (BB, D), k (BB, T, D), v (BB, T, Dv)
    q = q_ref[...].astype(jnp.float32)   # tiny; promote so products accumulate in f32
    k = k_ref[...]                       # native dtype, no full-tile cast
    v = v_ref[...]                       # native dtype, no full-tile cast

    # score[b, t] = sum_d q[b, d] * k[b, t, d]
    # VPU broadcast-multiply (f32 products via promotion) + XLU lane reduce.
    s = jnp.sum(q[:, None, :] * k, axis=-1)            # (BB, T) f32

    # Numerically stable softmax over T (dim=2 of the (B,1,T) tensor).
    # Exact normalization: attention rows sum to 1.
    m = jnp.max(s, axis=-1, keepdims=True)
    e = jnp.exp(s - m)
    denom = jnp.sum(e, axis=-1, keepdims=True)
    p = e * (1.0 / denom)                               # (BB, T) f32, exact divide

    # out[b, d] = sum_t p[b, t] * v[b, t, d]
    # VPU broadcast-multiply + XLU sublane reduce (f32 accumulation).
    o = jnp.sum(p[:, :, None] * v, axis=1)              # (BB, Dv) f32

    attn_ref[...] = p.astype(attn_ref.dtype)
    out_ref[...] = o.astype(out_ref.dtype)


def _round_up(x, m):
    return ((x + m - 1) // m) * m


def _choose_block_b(B, T, D, Dv, itemsize):
    """Pick the batch block BB (multiple of 8).

    Accounts for the real steady-state VMEM footprint per batch row:
      * double-buffered k & v input tiles (native dtype, lane-padded to 128),
      * the f32 product temporaries of the two VPU contractions,
      * q / out / attn rows (double-buffered, lane-padded).
    Targets ~24 MiB total — half of the explicit 48 MiB vmem limit, leaving
    headroom on v7x (64 MiB physical per TC) and v5e/v6e.
    """
    d_p = _round_up(D, 128)
    dv_p = _round_up(Dv, 128)
    t_p = _round_up(T, 128)

    row = 2 * T * (d_p + dv_p) * itemsize      # double-buffered k, v tiles
    row += T * (d_p + dv_p) * 4                # f32 product temporaries
    row += 2 * (d_p + dv_p + 2 * t_p) * 4      # q, out, attn (double-buffered)

    budget = 24 << 20
    bb = budget // max(row, 1)
    bb = min(bb, 2048)

    if B >= 32:
        # Keep >= 4 grid steps: megacore sharding on v7x + pipeline depth.
        bb = min(bb, (max(8, -(-B // 4)) // 8) * 8)

    # No point exceeding the batch (rounded down to a multiple of 8); for
    # B < 8 fall back to the minimum block of 8 (partial block handled by
    # Pallas masked stores / clamped loads).
    bb = min(bb, max(8, (B // 8) * 8))
    bb = max(8, (bb // 8) * 8)
    return bb


def attention_pallas(q, k, v):
    """q: (B, D), k: (B, T, D), v: (B, T, Dv) -> (out (B,1,Dv), attn (B,1,T))."""
    B, D = q.shape
    Bk, T, Dk = k.shape
    Bv, Tv, Dv = v.shape
    assert Bk == B and Bv == B and Dk == D and Tv == T

    itemsize = jnp.dtype(k.dtype).itemsize
    bb = _choose_block_b(B, T, D, Dv, itemsize)
    n_blocks = pl.cdiv(B, bb)

    out_dtype = q.dtype
    out_shapes = (
        jax.ShapeDtypeStruct((B, Dv), out_dtype),   # out, stored as a dense 2-D slab
        jax.ShapeDtypeStruct((B, T), out_dtype),    # attn, stored as a dense 2-D slab
    )

    grid_spec = pltpu.PrefetchScalarGridSpec(
        num_scalar_prefetch=0,
        grid=(n_blocks,),
        in_specs=[
            pl.BlockSpec((bb, D), lambda b: (b, 0)),
            pl.BlockSpec((bb, T, D), lambda b: (b, 0, 0)),
            pl.BlockSpec((bb, T, Dv), lambda b: (b, 0, 0)),
        ],
        out_specs=(
            pl.BlockSpec((bb, Dv), lambda b: (b, 0)),
            pl.BlockSpec((bb, T), lambda b: (b, 0)),
        ),
    )

    out2d, attn2d = pl.pallas_call(
        _attention_kernel,
        out_shape=out_shapes,
        grid_spec=grid_spec,
        compiler_params=pltpu.CompilerParams(
            dimension_semantics=("parallel",),
            vmem_limit_bytes=48 * 1024 * 1024,
        ),
    )(q, k, v)

    out = out2d[:, None, :]    # (B, 1, Dv) -- matches torch.bmm(attn, v)
    attn = attn2d[:, None, :]  # (B, 1, T)
    return out, attn


def attention_ref(q, k, v):
    score = jnp.einsum("bd,btd->bt", q, k)[:, None, :]   # (B,1,T)
    attn = jax.nn.softmax(score, axis=2)
    out = jnp.einsum("bqt,btd->bqd", attn, v)             # (B,1,Dv)
    return out, attn


def _check(B, T, D, key):
    kq, kk, kv = jax.random.split(key, 3)
    q = jax.random.normal(kq, (B, D), dtype=jnp.float32)
    k = jax.random.normal(kk, (B, T, D), dtype=jnp.float32)
    v = jax.random.normal(kv, (B, T, D), dtype=jnp.float32)

    out, attn = attention_pallas(q, k, v)
    out = jax.block_until_ready(out)
    attn = jax.block_until_ready(attn)

    out_r, attn_r = attention_ref(q, k, v)
    assert out.shape == (B, 1, D) and attn.shape == (B, 1, T)
    assert jnp.allclose(out, out_r, atol=1e-4, rtol=1e-4), (
        float(jnp.max(jnp.abs(out - out_r))))
    assert jnp.allclose(attn, attn_r, atol=1e-4, rtol=1e-4), (
        float(jnp.max(jnp.abs(attn - attn_r))))


if __name__ == "__main__":
    key = jax.random.PRNGKey(0)
    k0, k1 = jax.random.split(key, 2)
    # Small shapes consistent with the module's forward.
    _check(B=2, T=8, D=32, key=k0)
    # Batch not a multiple of the block size -> exercises the ragged tail
    # (one full block + one partial block, handled by Pallas, no padding).
    _check(B=10, T=8, D=32, key=k1)
    print("KERNEL_OK")
</pallas_src>

<mosaic_0001>
module attributes {stable_mosaic.version = 11 : i64} {
  func.func @_attention_kernel(%arg0: i32, %arg1: memref<8x32xf32, #tpu.memory_space<vmem>>, %arg2: memref<8x8x32xf32, #tpu.memory_space<vmem>>, %arg3: memref<8x8x32xf32, #tpu.memory_space<vmem>>, %arg4: memref<8x32xf32, #tpu.memory_space<vmem>>, %arg5: memref<8x8xf32, #tpu.memory_space<vmem>>) attributes {dimension_semantics = [#tpu.dimension_semantics<parallel>], iteration_bounds = array<i64: 1>, scalar_prefetch = 0 : i64, scratch_operands = 0 : i64, tpu.core_type = #tpu.core_type<tc>, window_params = [{transform_indices = @transform_0, window_bounds = array<i64: 8, 32>}, {transform_indices = @transform_1, window_bounds = array<i64: 8, 8, 32>}, {transform_indices = @transform_2, window_bounds = array<i64: 8, 8, 32>}, {transform_indices = @transform_3, window_bounds = array<i64: 8, 32>}, {transform_indices = @transform_4, window_bounds = array<i64: 8, 8>}]} {
    %c0 = arith.constant 0 : index
    %c0_0 = arith.constant 0 : index
    %0 = vector.load %arg1[%c0, %c0_0] : memref<8x32xf32, #tpu.memory_space<vmem>>, vector<8x32xf32>
    %c0_1 = arith.constant 0 : index
    %c0_2 = arith.constant 0 : index
    %c0_3 = arith.constant 0 : index
    %1 = vector.load %arg2[%c0_1, %c0_2, %c0_3] : memref<8x8x32xf32, #tpu.memory_space<vmem>>, vector<8x8x32xf32>
    %c0_4 = arith.constant 0 : index
    %c0_5 = arith.constant 0 : index
    %c0_6 = arith.constant 0 : index
    %2 = vector.load %arg3[%c0_4, %c0_5, %c0_6] : memref<8x8x32xf32, #tpu.memory_space<vmem>>, vector<8x8x32xf32>
    %3 = vector.shape_cast %0 : vector<8x32xf32> to vector<8x1x32xf32>
    %4 = vector.broadcast %3 : vector<8x1x32xf32> to vector<8x8x32xf32>
    %5 = arith.mulf %4, %1 : vector<8x8x32xf32>
    %cst = arith.constant dense<0.000000e+00> : vector<8x8xf32>
    %6 = vector.multi_reduction <add>, %5, %cst [2] : vector<8x8x32xf32> to vector<8x8xf32>
    %cst_7 = arith.constant dense<0xFF800000> : vector<8xf32>
    %7 = vector.multi_reduction <maximumf>, %6, %cst_7 [1] : vector<8x8xf32> to vector<8xf32>
    %8 = vector.shape_cast %7 : vector<8xf32> to vector<8x1xf32>
    %9 = vector.broadcast %8 : vector<8x1xf32> to vector<8x8xf32>
    %10 = arith.subf %6, %9 : vector<8x8xf32>
    %11 = math.exp %10 : vector<8x8xf32>
    %cst_8 = arith.constant dense<0.000000e+00> : vector<8xf32>
    %12 = vector.multi_reduction <add>, %11, %cst_8 [1] : vector<8x8xf32> to vector<8xf32>
    %13 = vector.shape_cast %12 : vector<8xf32> to vector<8x1xf32>
    %cst_9 = arith.constant 1.000000e+00 : f32
    %14 = vector.broadcast %cst_9 : f32 to vector<8x1xf32>
    %15 = arith.divf %14, %13 : vector<8x1xf32>
    %16 = vector.broadcast %15 : vector<8x1xf32> to vector<8x8xf32>
    %17 = arith.mulf %11, %16 : vector<8x8xf32>
    %18 = vector.shape_cast %17 : vector<8x8xf32> to vector<8x8x1xf32>
    %19 = vector.broadcast %18 : vector<8x8x1xf32> to vector<8x8x32xf32>
    %20 = arith.mulf %19, %2 : vector<8x8x32xf32>
    %cst_10 = arith.constant dense<0.000000e+00> : vector<8x32xf32>
    %21 = vector.multi_reduction <add>, %20, %cst_10 [1] : vector<8x8x32xf32> to vector<8x32xf32>
    %c0_11 = arith.constant 0 : index
    %c0_12 = arith.constant 0 : index
    %22 = vector.load %arg5[%c0_11, %c0_12] : memref<8x8xf32, #tpu.memory_space<vmem>>, vector<8x8xf32>
    tpu.vector_store %arg5[%c0_11, %c0_12], %17 {strides = array<i32>} : memref<8x8xf32, #tpu.memory_space<vmem>>, vector<8x8xf32>,
    %c0_13 = arith.constant 0 : index
    %c0_14 = arith.constant 0 : index
    %23 = vector.load %arg4[%c0_13, %c0_14] : memref<8x32xf32, #tpu.memory_space<vmem>>, vector<8x32xf32>
    tpu.vector_store %arg4[%c0_13, %c0_14], %21 {strides = array<i32>} : memref<8x32xf32, #tpu.memory_space<vmem>>, vector<8x32xf32>,
    return
  }
  func.func @transform_0(%arg0: i32) -> (i32, i32) {
    %c0_i32 = arith.constant 0 : i32
    %c0_i32_0 = arith.constant 0 : i32
    return %arg0, %c0_i32 : i32, i32
  }
  func.func @transform_1(%arg0: i32) -> (i32, i32, i32) {
    %c0_i32 = arith.constant 0 : i32
    %c0_i32_0 = arith.constant 0 : i32
    %c0_i32_1 = arith.constant 0 : i32
    return %arg0, %c0_i32, %c0_i32_0 : i32, i32, i32
  }
  func.func @transform_2(%arg0: i32) -> (i32, i32, i32) {
    %c0_i32 = arith.constant 0 : i32
    %c0_i32_0 = arith.constant 0 : i32
    %c0_i32_1 = arith.constant 0 : i32
    return %arg0, %c0_i32, %c0_i32_0 : i32, i32, i32
  }
  func.func @transform_3(%arg0: i32) -> (i32, i32) {
    %c0_i32 = arith.constant 0 : i32
    %c0_i32_0 = arith.constant 0 : i32
    return %arg0, %c0_i32 : i32, i32
  }
  func.func @transform_4(%arg0: i32) -> (i32, i32) {
    %c0_i32 = arith.constant 0 : i32
    %c0_i32_0 = arith.constant 0 : i32
    return %arg0, %c0_i32 : i32, i32
  }
}

</mosaic_0001>

<bundles_post_ra>
// kernel: tpu_custom_call.1
= control target key start
LH: loop header
LB: loop body
LE: loop exit
PB: predicated region body
PF: predicated region fallthrough
CT: control target
= control target key end

     0   :  { %10 = vsyncpa [#allocation3], 0  ;;  %s800_s0 = inlined_call_operand.hbm [shape: f32[2,32], index: 0, kind: input, shape index: {}]   ;;  %s801_s1 = inlined_call_operand.hbm [shape: f32[2,8,32], index: 1, kind: input, shape index: {}]   ;;  %s802_s2 = inlined_call_operand.hbm [shape: f32[2,8,32], index: 2, kind: input, shape index: {}]   ;;  %s803_s3 = inlined_call_operand.hbm [shape: f32[2,32], index: 3, kind: output, shape index: {0}]   ;;  %s804_s4 = inlined_call_operand.hbm [shape: f32[2,8], index: 4, kind: output, shape index: {1}]  }
   0x1   :  { %11 = vsyncpa [#allocation6], 0 }
   0x2   :  { %12 = vsyncpa [#allocation4], 0 }
   0x3   :  { %13 = vsyncpa [#allocation10], 0 }
   0x4   :  { %17 = vsyncadd [#allocation3], 96  ;;  %s18_s17 = sshll.u32 %s800_s0, 4  ;;  %s643_s18 = smov [#allocation2]   ;;  %s19_s17 = int_to_ptr.hbm [resolvable:$true] %s18_s17 }
   0x5   :  { %s20_s19 = sshll.u32 %s643_s18, 4  ;;  %s644_s20 = smov 32   ;;  %s21_s19 = int_to_ptr.vmem [resolvable:$true] %s20_s19 }
   0x6   :  { %s645_s21 = smov 2  }
   0x7   :  { %26 = dma.hbm_to_vmem [thread:$0]  %s19_s17, 32, %s21_s19, [#allocation3], %s644_s20, %s644_s20, %s645_s21  }
   0x8   :  { %30 = vsyncadd [#allocation6], 768  ;;  %s31_s24 = sshll.u32 %s801_s1, 4  ;;  %s646_s25 = smov [#allocation5]   ;;  %s32_s24 = int_to_ptr.hbm [resolvable:$true] %s31_s24 }
   0x9   :  { %s33_s26 = sshll.u32 %s646_s25, 4  ;;  %s647_s0 = smov 128   ;;  %s34_s26 = int_to_ptr.vmem [resolvable:$true] %s33_s26 }
   0xa   :  { %s648_s27 = smov 8  }
   0xb   :  { %39 = dma.hbm_to_vmem [thread:$0]  %s32_s24, 256, %s34_s26, [#allocation6], %s647_s0, %s647_s0, %s648_s27  }
   0xc   :  { %43 = vsyncadd [#allocation6], 768  ;;  %s44_s30 = sshll.u32 %s802_s2, 4  ;;  %s649_s5 = smov [#allocation7]   ;;  %s45_s30 = int_to_ptr.hbm [resolvable:$true] %s44_s30 }
   0xd   :  { %s46_s6 = sshll.u32 %s649_s5, 4  ;;  %s47_s6 = int_to_ptr.vmem [resolvable:$true] %s46_s6 }
   0xe   :  { %52 = dma.hbm_to_vmem [thread:$0]  %s45_s30, 256, %s47_s6, [#allocation6], %s647_s0, %s647_s0, %s648_s27  }
   0xf   :  { %635 = dma.done.wait [#allocation3], 128  }
  0x10   :  { %636 = vsyncadd [#allocation3], 4294967168 }
  0x11   :  { %637 = dma.done.wait [#allocation6], 2048  }
  0x12   :  { %638 = vsyncadd [#allocation6], 4294965248  ;;  %v65_v0 = vld [vmem:[#allocation2] sm:$0xff]  ;;  %v66_v1 = vld [vmem:[#allocation5] sm:$0xff]  ;;  %vm114_vm0 = vcmask 261120   ;;  %v147_v41 = vlaneseq  ;;  %vm157_vm1 = vcmask 1041409  }
  0x13   :  { %v90_v2 = vperm.slane %v65_v0, 0  ;;  %v84_v3 = vrot.slane %v65_v0, 2  ;;  %v86_v4 = vrot.slane %v65_v0, 4  ;;  %v83_v5 = vrot.slane %v65_v0, 1  ;;  %v68_v6 = vld [vmem:[#allocation5 + $0x10] sm:$0xff]  ;;  %v70_v7 = vld [vmem:[#allocation5 + $0x20] sm:$0xff] }
  0x14   :  { %v85_v8 = vrot.slane %v65_v0, 3  ;;  %v87_v9 = vrot.slane %v65_v0, 5  ;;  %v67_v14 = vld [vmem:[#allocation5 + $0x8] sm:$0xff]  ;;  %v69_v20 = vld [vmem:[#allocation5 + $0x18] sm:$0xff]  ;;  %v88_v25 = vrot.slane %v65_v0, 6  ;;  %v89_v28 = vrot.slane %v65_v0, 7 }
  0x15   :  { %v106_v10 = vmul.f32 %v90_v2, %v66_v1  ;;  %v92_v11 = vperm.slane %v84_v3, 0  ;;  %v94_v12 = vperm.slane %v86_v4, 0  ;;  %v91_v13 = vperm.slane %v83_v5, 0  ;;  %v71_v21 = vld [vmem:[#allocation5 + $0x28] sm:$0xff]  ;;  %v72_v31 = vld [vmem:[#allocation5 + $0x30] sm:$0xff]  ;;  %v73_v35 = vld [vmem:[#allocation5 + $0x38] sm:$0xff] }
  0x16   :  { %v93_v15 = vperm.slane %v85_v8, 0  ;;  %v95_v19 = vperm.slane %v87_v9, 0  ;;  %v96_v30 = vperm.slane %v88_v25, 0  ;;  %v97_v34 = vperm.slane %v89_v28, 0 }
  0x17   :  { %v115_v16 = vsel %vm114_vm0, %v106_v10, 0.0  ;;  %v108_v17 = vmul.f32 %v92_v11, %v68_v6  ;;  %v110_v18 = vmul.f32 %v94_v12, %v70_v7  ;;  %v107_v24 = vmul.f32 %v91_v13, %v67_v14 }
  0x18   :  { %116 = vadd.xlane.f32.xlu0 %v115_v16  ;;  %v109_v26 = vmul.f32 %v93_v15, %v69_v20  ;;  %v111_v27 = vmul.f32 %v95_v19, %v71_v21  ;;  %v112_v36 = vmul.f32 %v96_v30, %v72_v31  ;;  %v113_v37 = vmul.f32 %v97_v34, %v73_v35 }
  0x19   :  { %v121_v22 = vsel %vm114_vm0, %v108_v17, 0.0  ;;  %v127_v23 = vsel %vm114_vm0, %v110_v18, 0.0  ;;  %v118_v29 = vsel %vm114_vm0, %v107_v24, 0.0  ;;  %v698_v44 = vand.u32 127, %v147_v41 }
  0x1a   :  { %122 = vadd.xlane.f32.xlu1 %v121_v22  ;;  %128 = vadd.xlane.f32.xlu2 %v127_v23  ;;  %v124_v32 = vsel %vm114_vm0, %v109_v26, 0.0  ;;  %v130_v33 = vsel %vm114_vm0, %v111_v27, 0.0  ;;  %v133_v38 = vsel %vm114_vm0, %v112_v36, 0.0  ;;  %v136_v39 = vsel %vm114_vm0, %v113_v37, 0.0 }
  0x1b   :  { %vm159_vm2 = vcmask 1042434   ;;  %vm161_vm3 = vcmask 1043459   ;;  %vm163_vm4 = vcmask 1044484   ;;  %vm165_vm5 = vcmask 1045509  }
  0x1c   :  { %vm167_vm6 = vcmask 1046534   ;;  %vm169_vm7 = vcmask 1047559   ;;  %vm172_vm8 = vcmask 64512   ;;  %v650_v2 = vmov 0  }
  0x1d   :  { %496 = vset.pattern.permute.xlu2 %v650_v2  ;;  %495 = vset.pattern.permute.xlu1 %v650_v2 }
  0x1e   :  { %494 = vset.pattern.permute.xlu0 %v650_v2 }
  0x20   :  { %119 = vadd.xlane.f32.xlu0 %v118_v29 }
  0x22   :  { %125 = vadd.xlane.f32.xlu1 %v124_v32  ;;  %131 = vadd.xlane.f32.xlu2 %v130_v33 }
  0x28   :  { %134 = vadd.xlane.f32.xlu0 %v133_v38 }
  0x2a   :  { %137 = vadd.xlane.f32.xlu1 %v136_v39 }
  0x8b   :  { %v117_v40 = vpop.xlane.xlu0 %116 }
  0x8c   :  { %v149_v46 = vperm.slane %v117_v40, %v698_v44 }
  0x8d   :  { %v123_v42 = vpop.xlane.xlu1 %122  ;;  %v129_v43 = vpop.xlane.xlu2 %128 }
  0x8e   :  { %v151_v48 = vperm.slane %v123_v42, %v698_v44  ;;  %v153_v54 = vperm.slane %v129_v43, %v698_v44 }
  0x93   :  { %v120_v45 = vpop.xlane.xlu0 %119 }
  0x94   :  { %v150_v47 = vperm.slane %v120_v45, %v698_v44 }
  0x95   :  { %v126_v49 = vpop.xlane.xlu1 %125  ;;  %v132_v52 = vpop.xlane.xlu2 %131 }
  0x96   :  { %v158_v50 = vsel %vm157_vm1, %v150_v47, %v149_v46  ;;  %v152_v51 = vperm.slane %v126_v49, %v698_v44  ;;  %v154_v56 = vperm.slane %v132_v52, %v698_v44 }
  0x97   :  { %v160_v53 = vsel %vm159_vm2, %v151_v48, %v158_v50 }
  0x98   :  { %v162_v55 = vsel %vm161_vm3, %v152_v51, %v160_v53 }
  0x99   :  { %v164_v57 = vsel %vm163_vm4, %v153_v54, %v162_v55 }
  0x9a   :  { %v166_v61 = vsel %vm165_vm5, %v154_v56, %v164_v57 }
  0x9b   :  { %v135_v58 = vpop.xlane.xlu0 %134 }
  0x9c   :  { %v155_v59 = vperm.slane %v135_v58, %v698_v44 }
  0x9d   :  { %v138_v60 = vpop.xlane.xlu1 %137 }
  0x9e   :  { %v156_v62 = vperm.slane %v138_v60, %v698_v44  ;;  %v168_v63 = vsel %vm167_vm6, %v155_v59, %v166_v61 }
  0xa0   :  { %v170_v0 = vsel %vm169_vm7, %v156_v62, %v168_v63 }
  0xa1   :  { %v173_v1 = vsel %vm172_vm8, %v170_v0, -inf }
  0xa2   :  { %174 = vmax.xlane.f32.xlu2 %v173_v1 }
 0x115   :  { %v175_v3 = vpop.xlane.xlu2 %174 }
 0x116   :  { %v179_v4 = vperm.slane %v175_v3, 2  ;;  %v178_v5 = vperm.slane %v175_v3, 1  ;;  %v177_v6 = vperm.slane %v175_v3, 0  ;;  %v180_v10 = vperm.slane %v175_v3, 3 }
 0x117   :  { %v181_v11 = vperm.slane %v175_v3, 4  ;;  %v184_v12 = vperm.slane %v175_v3, 7  ;;  %v182_v20 = vperm.slane %v175_v3, 5  ;;  %v183_v22 = vperm.slane %v175_v3, 6 }
 0x118   :  { %v195_v7 = vsub.f32 %v123_v42, %v179_v4  ;;  %v194_v8 = vsub.f32 %v120_v45, %v178_v5  ;;  %v193_v9 = vsub.f32 %v117_v40, %v177_v6  ;;  %v196_v16 = vsub.f32 %v126_v49, %v180_v10 }
 0x119   :  { %v197_v17 = vsub.f32 %v129_v43, %v181_v11  ;;  %v200_v18 = vsub.f32 %v138_v60, %v184_v12  ;;  %v198_v27 = vsub.f32 %v132_v52, %v182_v20  ;;  %v199_v28 = vsub.f32 %v135_v58, %v183_v22 }
 0x11a   :  { %v205_v13 = vmul.f32 1.442695, %v195_v7  ;;  %v203_v14 = vmul.f32 1.442695, %v194_v8  ;;  %v201_v15 = vmul.f32 1.442695, %v193_v9 }
 0x11b   :  { %v207_v19 = vmul.f32 1.442695, %v196_v16  ;;  %v209_v21 = vmul.f32 1.442695, %v197_v17  ;;  %v215_v24 = vmul.f32 1.442695, %v200_v18 }
 0x11c   :  { %497 = vpow2.f32 %v205_v13  ;;  %v211_v29 = vmul.f32 1.442695, %v198_v27  ;;  %v213_v30 = vmul.f32 1.442695, %v199_v28 }
 0x11d   :  { %499 = vpow2.f32 %v203_v14 }
 0x11e   :  { %501 = vpow2.f32 %v201_v15 }
 0x11f   :  { %503 = vpow2.f32 %v207_v19 }
 0x120   :  { %505 = vpow2.f32 %v209_v21 }
 0x121   :  { %507 = vpow2.f32 %v215_v24 }
 0x122   :  { %v716_v23 = vpop.eup %497  ;;  %509 = vpow2.f32 %v211_v29 }
 0x123   :  { %v718_v25 = vpop.eup %499  ;;  %232 = vperm.xlu2 %496, %v716_v23   ;;  %511 = vpow2.f32 %v213_v30 }
 0x124   :  { %v721_v26 = vpop.eup %501  ;;  %229 = vperm.xlu1 %495, %v718_v25  }
 0x125   :  { %226 = vperm.xlu0 %494, %v721_v26   ;;  %v504_v31 = vpop.eup %503 }
 0x126   :  { %v725_v32 = vpop.eup %505 }
 0x127   :  { %v727_v33 = vpop.eup %507 }
 0x128   :  { %v510_v34 = vpop.eup %509 }
 0x129   :  { %v731_v35 = vpop.eup %511 }
 0x12b   :  { %235 = vperm.xlu2 %496, %v504_v31  }
 0x12c   :  { %238 = vperm.xlu1 %495, %v725_v32  }
 0x12d   :  { %247 = vperm.xlu0 %494, %v727_v33  }
 0x133   :  { %241 = vperm.xlu2 %496, %v510_v34  }
 0x134   :  { %244 = vperm.xlu1 %495, %v731_v35  }
 0x17d   :  { %v233_v36 = vpop.permute.xlu2 %232 }
 0x17e   :  { %v251_v45 = vperm.slane %v233_v36, %v698_v44  ;;  %v77_v36 = vld [vmem:[#allocation7 + $0x18] sm:$0xff] }
 0x185   :  { %v236_v39 = vpop.permute.xlu2 %235 }
 0x186   :  { %v252_v48 = vperm.slane %v236_v39, %v698_v44 }
 0x18d   :  { %v242_v49 = vpop.permute.xlu2 %241 }
 0x18e   :  { %v254_v53 = vperm.slane %v242_v49, %v698_v44 }
 0x196   :  { %v230_v37 = vpop.permute.xlu1 %229 }
 0x197   :  { %v227_v38 = vpop.permute.xlu0 %226  ;;  %v250_v40 = vperm.slane %v230_v37, %v698_v44  ;;  %v76_v37 = vld [vmem:[#allocation7 + $0x10] sm:$0xff] }
 0x198   :  { %v249_v41 = vperm.slane %v227_v38, %v698_v44 }
 0x19a   :  { %v257_v42 = vsel %vm157_vm1, %v250_v40, %v249_v41 }
 0x19b   :  { %v258_v46 = vsel %vm159_vm2, %v251_v45, %v257_v42 }
 0x19c   :  { %v259_v50 = vsel %vm161_vm3, %v252_v48, %v258_v46 }
 0x19e   :  { %v239_v43 = vpop.permute.xlu1 %238 }
 0x19f   :  { %v253_v47 = vperm.slane %v239_v43, %v698_v44  ;;  %v248_v52 = vpop.permute.xlu0 %247 }
 0x1a0   :  { %v256_v56 = vperm.slane %v248_v52, %v698_v44 }
 0x1a1   :  { %v260_v51 = vsel %vm163_vm4, %v253_v47, %v259_v50 }
 0x1a2   :  { %v261_v57 = vsel %vm165_vm5, %v254_v53, %v260_v51 }
 0x1a6   :  { %v245_v54 = vpop.permute.xlu1 %244 }
 0x1a7   :  { %v255_v55 = vperm.slane %v245_v54, %v698_v44  ;;  %v79_v54 = vld [vmem:[#allocation7 + $0x28] sm:$0xff] }
 0x1a9   :  { %v262_v58 = vsel %vm167_vm6, %v255_v55, %v261_v57  ;;  %v78_v55 = vld [vmem:[#allocation7 + $0x20] sm:$0xff] }
 0x1aa   :  { %v263_v59 = vsel %vm169_vm7, %v256_v56, %v262_v58 }
 0x1ab   :  { %v265_v60 = vsel %vm172_vm8, %v263_v59, 0.0 }
 0x1ac   :  { %266 = vadd.xlane.f32.xlu2 %v265_v60 }
 0x21f   :  { %v267_v61 = vpop.xlane.xlu2 %266 }
 0x220   :  { %513 = vrcp.f32 %v267_v61  ;;  %v279_v1 = vand.u32 2147483648, %v267_v61  ;;  %v277_v3 = vand.u32 2147483647, %v267_v61  ;;  %vm273_vm10 = vweird.f32 %v267_v61 }
 0x222   :  { %v280_v5 = vor.u32 1.1754944e-38, %v279_v1  ;;  %vm278_vm12 = vcmp.eq.f32.partialorder %v277_v3, 8.507059e+37 }
 0x226   :  { %v514_v62 = vpop.eup %513 }
 0x227   :  { %v269_v63 = vmul.f32 %v514_v62, %v267_v61  ;;  %vm274_vm9 = vweird.f32 %v514_v62 }
 0x228   :  { %vm275_vm11 = vmor %vm273_vm10, %vm274_vm9 }
 0x229   :  { %v270_v0 = vsub.f32 1.0, %v269_v63 }
 0x22b   :  { %v271_v2 = vmul.f32 %v514_v62, %v270_v0 }
 0x22d   :  { %v272_v4 = vadd.f32 %v514_v62, %v271_v2 }
 0x22f   :  { %v276_v6 = vsel %vm275_vm11, %v514_v62, %v272_v4 }
 0x230   :  { %v281_v7 = vsel %vm278_vm12, %v280_v5, %v276_v6 }
 0x231   :  { %v285_v8 = vperm.slane %v281_v7, 1  ;;  %v284_v9 = vperm.slane %v281_v7, 0  ;;  %v287_v12 = vperm.slane %v281_v7, 3  ;;  %v286_v13 = vperm.slane %v281_v7, 2 }
 0x232   :  { %v289_v16 = vperm.slane %v281_v7, 5  ;;  %v288_v17 = vperm.slane %v281_v7, 4  ;;  %v291_v20 = vperm.slane %v281_v7, 7  ;;  %v290_v21 = vperm.slane %v281_v7, 6 }
 0x233   :  { %v301_v10 = vmul.f32 %v718_v25, %v285_v8  ;;  %v300_v11 = vmul.f32 %v721_v26, %v284_v9  ;;  %v303_v14 = vmul.f32 %v504_v31, %v287_v12  ;;  %v302_v15 = vmul.f32 %v716_v23, %v286_v13  ;;  %v75_v25 = vld [vmem:[#allocation7 + $0x8] sm:$0xff]  ;;  %v74_v26 = vld [vmem:[#allocation7] sm:$0xff] }
 0x234   :  { %v305_v18 = vmul.f32 %v510_v34, %v289_v16  ;;  %v304_v19 = vmul.f32 %v725_v32, %v288_v17  ;;  %v307_v22 = vmul.f32 %v727_v33, %v291_v20  ;;  %v306_v24 = vmul.f32 %v731_v35, %v290_v21  ;;  %v81_v16 = vld [vmem:[#allocation7 + $0x38] sm:$0xff]  ;;  %v80_v17 = vld [vmem:[#allocation7 + $0x30] sm:$0xff] }
 0x235   :  { %315 = vperm.xlu0 %494, %v301_v10   ;;  %310 = vperm.xlu1 %495, %v300_v11  }
 0x23d   :  { %325 = vperm.xlu0 %494, %v303_v14   ;;  %320 = vperm.xlu1 %495, %v302_v15  }
 0x245   :  { %335 = vperm.xlu0 %494, %v305_v18   ;;  %330 = vperm.xlu1 %495, %v304_v19  }
 0x24d   :  { %345 = vperm.xlu0 %494, %v307_v22   ;;  %340 = vperm.xlu1 %495, %v306_v24  }
 0x2a7   :  { %v316_v23 = vpop.permute.xlu0 %315  ;;  %v311_v27 = vpop.permute.xlu1 %310 }
 0x2a8   :  { %v349_v28 = vmul.f32 %v316_v23, %v75_v25  ;;  %v348_v29 = vmul.f32 %v311_v27, %v74_v26  ;;  %v413_v45 = vperm.slane %v316_v23, %v698_v44  ;;  %v412_v46 = vperm.slane %v311_v27, %v698_v44 }
 0x2aa   :  { %v363_v30 = vsel %vm114_vm0, %v349_v28, 0.0  ;;  %v356_v31 = vsel %vm114_vm0, %v348_v29, 0.0  ;;  %v420_v56 = vsel %vm157_vm1, %v413_v45, %v412_v46 }
 0x2ab   :  { %v364_v32 = vrot.slane %v363_v30, 4  ;;  %v357_v34 = vrot.slane %v356_v31, 4 }
 0x2ad   :  { %v365_v39 = vadd.f32 %v364_v32, %v363_v30  ;;  %v358_v35 = vadd.f32 %v357_v34, %v356_v31 }
 0x2af   :  { %v326_v38 = vpop.permute.xlu0 %325  ;;  %v321_v33 = vpop.permute.xlu1 %320  ;;  %v366_v49 = vrot.slane %v365_v39, 2  ;;  %v359_v50 = vrot.slane %v358_v35, 2 }
 0x2b0   :  { %v351_v40 = vmul.f32 %v326_v38, %v77_v36  ;;  %v350_v41 = vmul.f32 %v321_v33, %v76_v37  ;;  %v414_v53 = vperm.slane %v321_v33, %v698_v44  ;;  %v415_v57 = vperm.slane %v326_v38, %v698_v44 }
 0x2b1   :  { %v367_v61 = vadd.f32 %v366_v49, %v365_v39  ;;  %v360_v62 = vadd.f32 %v359_v50, %v358_v35 }
 0x2b2   :  { %v377_v42 = vsel %vm114_vm0, %v351_v40, 0.0  ;;  %v370_v43 = vsel %vm114_vm0, %v350_v41, 0.0  ;;  %v421_v2 = vsel %vm159_vm2, %v414_v53, %v420_v56 }
 0x2b3   :  { %v378_v47 = vrot.slane %v377_v42, 4  ;;  %v371_v48 = vrot.slane %v370_v43, 4  ;;  %v368_v9 = vrot.slane %v367_v61, 1  ;;  %v361_v10 = vrot.slane %v360_v62, 1 }
 0x2b4   :  { %v422_v11 = vsel %vm161_vm3, %v415_v57, %v421_v2 }
 0x2b5   :  { %v379_v51 = vadd.f32 %v378_v47, %v377_v42  ;;  %v372_v52 = vadd.f32 %v371_v48, %v370_v43  ;;  %v369_v25 = vadd.f32 %v368_v9, %v367_v61  ;;  %v362_v26 = vadd.f32 %v361_v10, %v360_v62 }
 0x2b7   :  { %v373_v58 = vrot.slane %v372_v52, 2  ;;  %v336_v59 = vpop.permute.xlu0 %335  ;;  %v331_v60 = vpop.permute.xlu1 %330  ;;  %v380_v1 = vrot.slane %v379_v51, 2  ;;  %v437_v43 = vsel %vm157_vm1, %v369_v25, %v362_v26 }
 0x2b8   :  { %v353_v63 = vmul.f32 %v336_v59, %v79_v54  ;;  %v352_v0 = vmul.f32 %v331_v60, %v78_v55  ;;  %v416_v5 = vperm.slane %v331_v60, %v698_v44  ;;  %v417_v14 = vperm.slane %v336_v59, %v698_v44 }
 0x2b9   :  { %v374_v6 = vadd.f32 %v373_v58, %v372_v52  ;;  %v381_v12 = vadd.f32 %v380_v1, %v379_v51 }
 0x2ba   :  { %v391_v3 = vsel %vm114_vm0, %v353_v63, 0.0  ;;  %v384_v4 = vsel %vm114_vm0, %v352_v0, 0.0  ;;  %v423_v18 = vsel %vm163_vm4, %v416_v5, %v422_v11 }
 0x2bb   :  { %v392_v7 = vrot.slane %v391_v3, 4  ;;  %v385_v8 = vrot.slane %v384_v4, 4  ;;  %v375_v19 = vrot.slane %v374_v6, 1  ;;  %v382_v28 = vrot.slane %v381_v12, 1 }
 0x2bc   :  { %v424_v30 = vsel %vm165_vm5, %v417_v14, %v423_v18 }
 0x2bd   :  { %v393_v13 = vadd.f32 %v392_v7, %v391_v3  ;;  %v386_v15 = vadd.f32 %v385_v8, %v384_v4  ;;  %v376_v38 = vadd.f32 %v375_v19, %v374_v6  ;;  %v383_v45 = vadd.f32 %v382_v28, %v381_v12 }
 0x2bf   :  { %v394_v20 = vrot.slane %v393_v13, 2  ;;  %v387_v21 = vrot.slane %v386_v15, 2  ;;  %v346_v22 = vpop.permute.xlu0 %345  ;;  %v341_v24 = vpop.permute.xlu1 %340  ;;  %v438_v48 = vsel %vm159_vm2, %v376_v38, %v437_v43 }
 0x2c0   :  { %v355_v23 = vmul.f32 %v346_v22, %v81_v16  ;;  %v354_v27 = vmul.f32 %v341_v24, %v80_v17  ;;  %v418_v31 = vperm.slane %v341_v24, %v698_v44  ;;  %v419_v36 = vperm.slane %v346_v22, %v698_v44 }
 0x2c1   :  { %v388_v29 = vadd.f32 %v387_v21, %v386_v15  ;;  %v395_v32 = vadd.f32 %v394_v20, %v393_v13  ;;  %v439_v54 = vsel %vm161_vm3, %v383_v45, %v438_v48 }
 0x2c2   :  { %v405_v34 = vsel %vm114_vm0, %v355_v23, 0.0  ;;  %v398_v37 = vsel %vm114_vm0, %v354_v27, 0.0  ;;  %v425_v40 = vsel %vm167_vm6, %v418_v31, %v424_v30 }
 0x2c3   :  { %v389_v33 = vrot.slane %v388_v29, 1  ;;  %v406_v39 = vrot.slane %v405_v34, 4  ;;  %v399_v35 = vrot.slane %v398_v37, 4  ;;  %v396_v46 = vrot.slane %v395_v32, 1 }
 0x2c4   :  { %v426_v47 = vsel %vm169_vm7, %v419_v36, %v425_v40 }
 0x2c5   :  { %v407_v41 = vadd.f32 %v406_v39, %v405_v34  ;;  %v400_v42 = vadd.f32 %v399_v35, %v398_v37  ;;  %v390_v49 = vadd.f32 %v389_v33, %v388_v29  ;;  %428 = vst.msk [vmem:[#allocation9] sm:$0xff] %vm172_vm8, %v426_v47  ;;  %v397_v53 = vadd.f32 %v396_v46, %v395_v32 }
 0x2c7   :  { %v408_v44 = vrot.slane %v407_v41, 2  ;;  %v401_v50 = vrot.slane %v400_v42, 2  ;;  %v440_v55 = vsel %vm163_vm4, %v390_v49, %v439_v54 }
 0x2c8   :  { %v441_v60 = vsel %vm165_vm5, %v397_v53, %v440_v55 }
 0x2c9   :  { %v409_v51 = vadd.f32 %v408_v44, %v407_v41  ;;  %v402_v52 = vadd.f32 %v401_v50, %v400_v42 }
 0x2cb   :  { %v410_v56 = vrot.slane %v409_v51, 1  ;;  %v403_v57 = vrot.slane %v402_v52, 1 }
 0x2cd   :  { %v411_v58 = vadd.f32 %v410_v56, %v409_v51  ;;  %v404_v59 = vadd.f32 %v403_v57, %v402_v52 }
 0x2cf   :  { %v442_v61 = vsel %vm167_vm6, %v404_v59, %v441_v60 }
 0x2d0   :  { %v443_v62 = vsel %vm169_vm7, %v411_v58, %v442_v61 }
 0x2d1   :  { %445 = vst.msk [vmem:[#allocation8] sm:$0xff] %vm114_vm0, %v443_v62 }
 0x2d2   :  { %449 = vsyncadd [#allocation4], 96  ;;  %s452_s7 = sshll.u32 %s803_s3, 4  ;;  %s651_s8 = smov [#allocation8]   ;;  %s453_s7 = int_to_ptr.hbm [resolvable:$true] %s452_s7 }
 0x2d3   :  { %s450_s9 = sshll.u32 %s651_s8, 4  ;;  %s451_s9 = int_to_ptr.vmem [resolvable:$true] %s450_s9 }
 0x2d4   :  { %458 = dma.vmem_to_hbm [thread:$0]  %s451_s9, 32, %s453_s7, [#allocation4], %s644_s20, %s644_s20, %s645_s21  }
 0x2d5   :  { %462 = vsyncadd [#allocation10], 96  ;;  %s465_s12 = sshll.u32 %s804_s4, 4  ;;  %s652_s13 = smov [#allocation9]   ;;  %s466_s12 = int_to_ptr.hbm [resolvable:$true] %s465_s12 }
 0x2d6   :  { %s463_s14 = sshll.u32 %s652_s13, 4  ;;  %s464_s14 = int_to_ptr.vmem [resolvable:$true] %s463_s14 }
 0x2d7   :  { %471 = dma.vmem_to_hbm [thread:$0]  %s464_s14, 32, %s466_s12, [#allocation10], %s644_s20, %s644_s20, %s645_s21  }
 0x2d8   :  { %639 = dma.done.wait [#allocation4], 128  }
 0x2d9   :  { %640 = vsyncadd [#allocation4], 4294967168 }
 0x2da   :  { %641 = dma.done.wait [#allocation10], 128  }
 0x2db   :  { %642 = vsyncadd [#allocation10], 4294967168 }
 0x2dc   :  { %480 = vsyncpa [#allocation3], 1 }
 0x2dd   :  { %481 = vsyncpa [#allocation6], 1 }
 0x2de   :  { %482 = vsyncpa [#allocation4], 1 }
 0x2df   :  { %483 = vsyncpa [#allocation10], 1 }

</bundles_post_ra>
